<compile_context>
chip_gen: v7x
topology: tpu7x:2x2x1
jax: 0.10.0
libtpu: 0.0.40
codegen_flags: <defaults>
</compile_context>

<pallas_src>
import jax
import jax.numpy as jnp
import numpy as np
from jax.experimental import pallas as pl
from jax.experimental.pallas import tpu as pltpu

# Fits every generation: <= ~48 MiB required on v7x (64 MiB physical VMEM);
# v5e/v6e (128 MiB) can raise this to 64-96 MiB together with bigger tiles.
VMEM_LIMIT_BYTES = 32 * 1024 * 1024


def _round_up(x, m):
    return ((x + m - 1) // m) * m


def _pick_tile(requested, dim, quantum):
    """Pick a tile: a multiple of `quantum` that divides `dim` padded up to a
    multiple of `quantum`.  Never degenerates below `quantum`, so block shapes
    always satisfy the TPU (8 sublane, 128 lane) rule.  Returns (tile, dim_p)."""
    dim_p = _round_up(dim, quantum)
    t = min(_round_up(requested, quantum), dim_p)
    while dim_p % t:
        t -= quantum
    return t, dim_p


# ----------------------- tiled Linear (X @ W + b), full K ---------------------
def _linear_kernel(x_ref, w_ref, b_ref, o_ref):
    # Full-K block: single MXU dot, f32 accumulation, no scratch accumulator.
    o_ref[...] = (jnp.dot(x_ref[...].astype(w_ref.dtype), w_ref[...],
                          preferred_element_type=jnp.float32)
                  + b_ref[...]).astype(o_ref.dtype)


def run_linear(x, w, b, *, tm=512, tn=1024, out_dtype=jnp.float32):
    """x: (M, K); w: (K, N); b: (1, N) -> (M, N).

    K is kept whole (W_ih / W_out easily fit VMEM for this model), so the K
    grid collapses to 1 -- no accumulator revisits, weights stay resident.
    M is padded to a multiple of 8 and N to a multiple of 128; tiles divide the
    padded dims exactly (lane-dense output tile), result is sliced back."""
    M, K = x.shape
    Kw, N = w.shape
    assert Kw == K and b.shape == (1, N)

    tm, Mp = _pick_tile(tm, M, 8)
    tn, Np = _pick_tile(tn, N, 128)

    xp = x if Mp == M else jnp.pad(x, ((0, Mp - M), (0, 0)))
    wp = w if Np == N else jnp.pad(w, ((0, 0), (0, Np - N)))
    bp = b if Np == N else jnp.pad(b, ((0, 0), (0, Np - N)))

    out = pl.pallas_call(
        _linear_kernel,
        out_shape=jax.ShapeDtypeStruct((Mp, Np), out_dtype),
        grid_spec=pltpu.PrefetchScalarGridSpec(
            num_scalar_prefetch=0,
            grid=(Mp // tm, Np // tn),
            in_specs=[
                pl.BlockSpec((tm, K), lambda i, j: (i, 0)),
                pl.BlockSpec((K, tn), lambda i, j: (0, j)),
                pl.BlockSpec((1, tn), lambda i, j: (0, j)),
            ],
            out_specs=pl.BlockSpec((tm, tn), lambda i, j: (i, j)),
        ),
        compiler_params=pltpu.CompilerParams(
            dimension_semantics=("parallel", "parallel"),
            vmem_limit_bytes=VMEM_LIMIT_BYTES),
    )(xp, wp, bp)

    if Mp != M or Np != N:
        out = out[:M, :N]
    return out


# ------------------------------ LSTM recurrence -------------------------------
# Input gates X@W_ih + (b_ih+b_hh) are precomputed (hoisted out of the loop).
# Gate order is [i, f, o, g]; the i/f/o columns of W_ih, W_hh and the bias are
# pre-scaled by 0.5 so one tanh over all 4H lanes gives every gate activation:
#   sigmoid(z) == 0.5 * (tanh(0.5*z) + 1).
def _lstm_kernel(xg_ref, whh_ref, out_ref, h_sc, c_sc):
    tb = pl.program_id(1)  # time-block index (innermost, sequential)

    @pl.when(tb == 0)
    def _():
        h_sc[...] = jnp.zeros_like(h_sc)
        c_sc[...] = jnp.zeros_like(c_sc)

    H = h_sc.shape[-1]
    Tt = xg_ref.shape[1]
    w = whh_ref[...]  # (H, 4H); same block every grid step -> stays resident

    # Static unroll over the (small) time block: all ref indices are static.
    for t in range(Tt):
        h = h_sc[...]
        gates = (xg_ref[:, t, :].astype(jnp.float32)
                 + jnp.dot(h.astype(w.dtype), w,
                           preferred_element_type=jnp.float32))
        act = jnp.tanh(gates)                 # single EUP region over 4H lanes
        ifo = 0.5 * act[:, :3 * H] + 0.5      # == sigmoid of the original preact
        i_g = ifo[:, 0:H]
        f_g = ifo[:, H:2 * H]
        o_g = ifo[:, 2 * H:3 * H]
        g_g = act[:, 3 * H:]
        c_new = f_g * c_sc[...] + i_g * g_g
        h_new = o_g * jnp.tanh(c_new)
        c_sc[...] = c_new
        h_sc[...] = h_new
        out_ref[:, t, :] = h_new.astype(out_ref.dtype)   # lane-dense on H


def run_lstm(xg, w_hh, *, t_block=8, b_block=None, out_dtype=jnp.float32):
    """xg: (B, T, 4H) precomputed input gates (bias folded); w_hh: (H, 4H).

    Returns (B, T, H) hidden states batch-major -- no relayout needed before
    the vocab projection.  h/c live in f32 VMEM scratch across the sequential
    time axis; the batch axis is 'parallel' (megacore-shardable on v7x)."""
    B, T, G = xg.shape
    H = w_hh.shape[0]
    assert G == 4 * H and w_hh.shape == (H, G)

    # v7x has 2 TensorCores: split the batch across 2 parallel blocks only when
    # it is big enough to keep each core's MXU busy (B >= 512, per review);
    # on v5e/v6e a single full-width block maximizes MXU utilization.
    if b_block is None:
        b_block = B // 2 if (B >= 512 and B % 2 == 0) else B
    Bb = b_block if (B % b_block == 0) else B

    # Time block: a multiple of 8 sublanes; T is padded up so the grid is exact.
    # Padded steps execute after all real ones (time axis is innermost and
    # monotonic) so they cannot corrupt valid outputs; they are sliced off.
    Tt = max(8, 8 * (t_block // 8))
    Tp = _round_up(T, Tt)
    if Tp != T:
        xg = jnp.pad(xg, ((0, 0), (0, Tp - T), (0, 0)))

    out = pl.pallas_call(
        _lstm_kernel,
        out_shape=jax.ShapeDtypeStruct((B, Tp, H), out_dtype),
        grid_spec=pltpu.PrefetchScalarGridSpec(
            num_scalar_prefetch=0,
            grid=(B // Bb, Tp // Tt),
            in_specs=[
                pl.BlockSpec((Bb, Tt, G), lambda bb, tb: (bb, tb, 0)),
                pl.BlockSpec((H, G), lambda bb, tb: (0, 0)),
            ],
            out_specs=pl.BlockSpec((Bb, Tt, H), lambda bb, tb: (bb, tb, 0)),
            scratch_shapes=[
                pltpu.VMEM((Bb, H), jnp.float32),   # h state (f32 always)
                pltpu.VMEM((Bb, H), jnp.float32),   # c state (f32 always)
            ],
        ),
        compiler_params=pltpu.CompilerParams(
            dimension_semantics=("parallel", "arbitrary"),
            vmem_limit_bytes=VMEM_LIMIT_BYTES),
    )(xg, w_hh)

    return out[:, :T] if Tp != T else out


# --------------------------- param preparation --------------------------------
def _reorder_and_prescale(p_4h):
    """PyTorch LSTM gate blocks [i,f,g,o] along axis 0 -> [i,f,o,g], with the
    i/f/o blocks pre-scaled by 0.5 (exact in fp) so the kernel can compute all
    four gate activations with a single tanh."""
    H = p_4h.shape[0] // 4
    i, f, g, o = p_4h[:H], p_4h[H:2 * H], p_4h[2 * H:3 * H], p_4h[3 * H:]
    return jnp.concatenate([0.5 * i, 0.5 * f, 0.5 * o, g], axis=0)


def prepare_params(pt, *, weight_dtype=jnp.float32):
    """PyTorch-layout params -> kernel layout.

    Gates reordered to [i,f,o,g] and i/f/o pre-scaled by 0.5; weights transposed
    to (in, out); the two LSTM biases folded (added once in the hoisted input
    projection).  weight_dtype=jnp.bfloat16 halves HBM traffic / doubles MXU
    rate for embed / W_ih / W_out on v6e/v7x; W_hh and the biases stay f32
    (recurrent bf16 drift compounds over T and W_hh is tiny anyway)."""
    b_lstm = _reorder_and_prescale(pt["b_ih"] + pt["b_hh"])
    return {
        "embed": pt["embed"].astype(weight_dtype),
        "w_ih": _reorder_and_prescale(pt["w_ih_pt"]).T.astype(weight_dtype),  # (E, 4H)
        "w_hh": _reorder_and_prescale(pt["w_hh_pt"]).T.astype(jnp.float32),   # (H, 4H)
        "b_lstm": b_lstm[None, :].astype(jnp.float32),                        # (1, 4H)
        "w_out": pt["w_out_pt"].T.astype(weight_dtype),                       # (H, V)
        "b_out": pt["b_out"][None, :].astype(jnp.float32),                    # (1, V)
    }


# ----------------------------- DecoderRNN forward -----------------------------
def decoder_forward(params, features, captions, *, t_block=8,
                    logits_dtype=jnp.float32):
    embed = params["embed"]
    B, T = captions.shape
    E = embed.shape[1]
    H = params["w_hh"].shape[0]
    V = params["w_out"].shape[1]
    io_dtype = embed.dtype  # bf16 when prepare_params(weight_dtype=bf16)

    # LSTM input in the natural batch-major layout (B, T, E): slot 0 per row is
    # the image feature, slots 1..T-1 are embeddings of captions[:, :-1].
    # Everything downstream stays batch-major -> no transposes anywhere.
    emb = embed[captions[:, :T - 1]]                              # (B, T-1, E)
    x = jnp.concatenate([features[:, None, :].astype(io_dtype), emb], axis=1)

    # Hoisted input projection + folded bias: one MXU-efficient full-K matmul
    # over all B*T rows instead of T tiny per-step matmuls.
    xg = run_linear(x.reshape(B * T, E), params["w_ih"], params["b_lstm"],
                    tm=512, tn=2048, out_dtype=io_dtype)
    xg = xg.reshape(B, T, 4 * H)                                  # free reshape

    # Recurrence emits (B, T, H) directly.
    lstm_out = run_lstm(xg, params["w_hh"], t_block=t_block, out_dtype=io_dtype)

    # Lane-dense, padded vocab projection; (B*T, V) -> (B, T, V) is free.
    # tm=512 halves the number of W_out streams from HBM (v5e bottleneck).
    logits = run_linear(lstm_out.reshape(B * T, H), params["w_out"],
                        params["b_out"], tm=512, tn=1024, out_dtype=logits_dtype)
    return logits.reshape(B, T, V)


# ---------------------------- pure-JAX reference ------------------------------
def decoder_forward_ref(pt, features, captions):
    """Reference built straight from the PyTorch-layout params ([i,f,g,o])."""
    embeds = pt["embed"][captions]                                # (B, T, E)
    x = jnp.concatenate([features[:, None, :], embeds[:, :-1, :]], axis=1)
    B, T, _ = x.shape
    H = pt["w_hh_pt"].shape[1]
    w_ih = pt["w_ih_pt"].T
    w_hh = pt["w_hh_pt"].T
    b = pt["b_ih"] + pt["b_hh"]
    h = jnp.zeros((B, H), jnp.float32)
    c = jnp.zeros((B, H), jnp.float32)
    outs = []
    for t in range(T):
        gates = x[:, t] @ w_ih + h @ w_hh + b
        i = jax.nn.sigmoid(gates[:, :H])
        f = jax.nn.sigmoid(gates[:, H:2 * H])
        g = jnp.tanh(gates[:, 2 * H:3 * H])
        o = jax.nn.sigmoid(gates[:, 3 * H:])
        c = f * c + i * g
        h = o * jnp.tanh(c)
        outs.append(h)
    lstm_out = jnp.stack(outs, axis=1)                            # (B, T, H)
    return lstm_out @ pt["w_out_pt"].T + pt["b_out"]


# ------------------------------------ main ------------------------------------
if __name__ == "__main__":
    # Small, forward-consistent shapes.  V=64 (pads to a 128-lane tile), T=10
    # (pads to a 16-step time grid) so the padding/slicing paths are exercised.
    B, T = 2, 10           # batch, caption length
    E, H, V = 32, 32, 64   # embed_size, hidden_size, vocab_size

    key = jax.random.PRNGKey(0)
    ks = jax.random.split(key, 10)
    scale = 0.1

    pt_params = {
        "embed": scale * jax.random.normal(ks[0], (V, E), jnp.float32),        # nn.Embedding
        "w_ih_pt": scale * jax.random.normal(ks[1], (4 * H, E), jnp.float32),  # lstm.weight_ih_l0
        "w_hh_pt": scale * jax.random.normal(ks[2], (4 * H, H), jnp.float32),  # lstm.weight_hh_l0
        "b_ih": scale * jax.random.normal(ks[3], (4 * H,), jnp.float32),
        "b_hh": scale * jax.random.normal(ks[4], (4 * H,), jnp.float32),
        "w_out_pt": scale * jax.random.normal(ks[5], (V, H), jnp.float32),     # hidden2vocab.weight
        "b_out": scale * jax.random.normal(ks[6], (V,), jnp.float32),          # hidden2vocab.bias
    }

    features = jax.random.normal(ks[7], (B, E), jnp.float32)
    captions = jax.random.randint(ks[8], (B, T), 0, V, jnp.int32)

    ref = jax.block_until_ready(decoder_forward_ref(pt_params, features, captions))

    # f32 path: strict reference check.
    params_f32 = prepare_params(pt_params, weight_dtype=jnp.float32)
    out_f32 = jax.block_until_ready(decoder_forward(params_f32, features, captions))
    assert out_f32.shape == (B, T, V), out_f32.shape
    np.testing.assert_allclose(np.asarray(out_f32), np.asarray(ref),
                               rtol=1e-4, atol=1e-4)

    # bf16 path (production default on v5e/v6e/v7x): halves HBM traffic on the
    # big tensors, doubles MXU rate; f32 accumulation + f32 h/c/W_hh keep drift
    # small.  Loose tolerance vs the f32 reference.
    params_bf16 = prepare_params(pt_params, weight_dtype=jnp.bfloat16)
    out_bf16 = jax.block_until_ready(
        decoder_forward(params_bf16, features, captions, logits_dtype=jnp.bfloat16))
    assert out_bf16.shape == (B, T, V), out_bf16.shape
    np.testing.assert_allclose(np.asarray(out_bf16.astype(jnp.float32)),
                               np.asarray(ref), rtol=5e-2, atol=3e-2)

    print("KERNEL_OK")
</pallas_src>

<mosaic_0001>
module attributes {stable_mosaic.version = 11 : i64} {
  func.func @_linear_kernel(%arg0: i32, %arg1: i32, %arg2: memref<24x32xf32, #tpu.memory_space<vmem>>, %arg3: memref<32x128xf32, #tpu.memory_space<vmem>>, %arg4: memref<1x128xf32, #tpu.memory_space<vmem>>, %arg5: memref<24x128xf32, #tpu.memory_space<vmem>>) attributes {dimension_semantics = [#tpu.dimension_semantics<parallel>, #tpu.dimension_semantics<parallel>], iteration_bounds = array<i64: 1, 1>, scalar_prefetch = 0 : i64, scratch_operands = 0 : i64, tpu.core_type = #tpu.core_type<tc>, window_params = [{transform_indices = @transform_0, window_bounds = array<i64: 24, 32>}, {transform_indices = @transform_1, window_bounds = array<i64: 32, 128>}, {transform_indices = @transform_2, window_bounds = array<i64: 1, 128>}, {transform_indices = @transform_3, window_bounds = array<i64: 24, 128>}]} {
    %c0 = arith.constant 0 : index
    %c0_0 = arith.constant 0 : index
    %0 = vector.load %arg2[%c0, %c0_0] : memref<24x32xf32, #tpu.memory_space<vmem>>, vector<24x32xf32>
    %c0_1 = arith.constant 0 : index
    %c0_2 = arith.constant 0 : index
    %1 = vector.load %arg3[%c0_1, %c0_2] : memref<32x128xf32, #tpu.memory_space<vmem>>, vector<32x128xf32>
    %cst = arith.constant dense<0.000000e+00> : vector<24x128xf32>
    %2 = tpu.matmul %0, %1, %cst {dimension_numbers = #tpu.dot_dimension_numbers<[1], [0], [0], [1], [0, 0, 1, 1], [], []>} : vector<24x32xf32>, vector<32x128xf32>, vector<24x128xf32> -> vector<24x128xf32>
    %c0_3 = arith.constant 0 : index
    %c0_4 = arith.constant 0 : index
    %3 = vector.load %arg4[%c0_3, %c0_4] : memref<1x128xf32, #tpu.memory_space<vmem>>, vector<1x128xf32>
    %4 = vector.broadcast %3 : vector<1x128xf32> to vector<24x128xf32>
    %5 = arith.addf %2, %4 : vector<24x128xf32>
    %c0_5 = arith.constant 0 : index
    %c0_6 = arith.constant 0 : index
    %6 = vector.load %arg5[%c0_5, %c0_6] : memref<24x128xf32, #tpu.memory_space<vmem>>, vector<24x128xf32>
    tpu.vector_store %arg5[%c0_5, %c0_6], %5 {strides = array<i32>} : memref<24x128xf32, #tpu.memory_space<vmem>>, vector<24x128xf32>,
    return
  }
  func.func @transform_0(%arg0: i32, %arg1: i32) -> (i32, i32) {
    %c0_i32 = arith.constant 0 : i32
    %c0_i32_0 = arith.constant 0 : i32
    return %arg0, %c0_i32 : i32, i32
  }
  func.func @transform_1(%arg0: i32, %arg1: i32) -> (i32, i32) {
    %c0_i32 = arith.constant 0 : i32
    %c0_i32_0 = arith.constant 0 : i32
    return %c0_i32, %arg1 : i32, i32
  }
  func.func @transform_2(%arg0: i32, %arg1: i32) -> (i32, i32) {
    %c0_i32 = arith.constant 0 : i32
    %c0_i32_0 = arith.constant 0 : i32
    return %c0_i32, %arg1 : i32, i32
  }
  func.func @transform_3(%arg0: i32, %arg1: i32) -> (i32, i32) {
    %c0_i32 = arith.constant 0 : i32
    return %arg0, %arg1 : i32, i32
  }
}

</mosaic_0001>

<bundles_post_ra>
// kernel: tpu_custom_call.1
= control target key start
LH: loop header
LB: loop body
LE: loop exit
PB: predicated region body
PF: predicated region fallthrough
CT: control target
= control target key end

     0   :  { %8 = vsyncpa [#allocation3], 0  ;;  %s365_s0 = inlined_call_operand.hbm [shape: f32[24,32], index: 0, kind: input, shape index: {}]   ;;  %s366_s1 = inlined_call_operand.hbm [shape: f32[32,128], index: 1, kind: input, shape index: {}]   ;;  %s367_s2 = inlined_call_operand.vmem [shape: f32[1,128], index: 2, kind: input, shape index: {}]   ;;  %s368_s3 = inlined_call_operand.hbm [shape: f32[24,128], index: 3, kind: output, shape index: {}]  }
   0x1   :  { %9 = vsyncpa [#allocation6], 0 }
   0x2   :  { %10 = vsyncpa [#allocation4], 0  ;;  %s286_s12 = smov [#allocation2]   ;;  %s214_s16 = scalar_lea.hbm %s365_s0, 384 }
   0x3   :  { %s16_s13 = sshll.u32 %s286_s12, 4  ;;  %p215_p0 = scmp.ne.s32.totalorder %s365_s0, %s214_s16  ;;  %s17_s13 = int_to_ptr.vmem [resolvable:$true] %s16_s13 }
   0x4   :  { %p218_p1 = scmp.lt.u32.totalorder %s214_s16, %s365_s0 }
   0x6   :  { %p220_p2 = pnand %p218_p1, %p215_p0 }
   0x8   :  { %223 = shalt.err (!%p220_p2)
}
   0x9   :  { %s224_s21 = scalar_lea.vmem %s17_s13, 384  ;;  %p229_p4 = scmp.lt.s32.totalorder %s17_s13, %s17_s13 }
   0xa   :  { %p225_p3 = scmp.ne.s32.totalorder %s17_s13, %s224_s21  ;;  %p230_p5 = scmp.lt.s32.totalorder %s224_s21, %s224_s21 }
   0xc   :  { %p231_p6 = por %p230_p5, %p229_p4 }
   0xe   :  { %p232_p7 = pnand %p231_p6, %p225_p3 }
  0x10   :  { %235 = shalt.err (!%p232_p7)
}
  0x11   :  { %s287_s22 = smov 128   ;;  %s288_s23 = smov 8  }
  0x12   :  { %22 = dma.hbm_to_vmem [thread:$0]  %s365_s0, 384, %s17_s13, [#allocation3], %s287_s22, %s287_s22, %s288_s23  }
  0x13   :  { %s289_s26 = smov [#allocation5]   ;;  %s236_s30 = scalar_lea.hbm %s366_s1, 512 }
  0x14   :  { %s28_s27 = sshll.u32 %s289_s26, 4  ;;  %p237_p8 = scmp.ne.s32.totalorder %s366_s1, %s236_s30  ;;  %s29_s27 = int_to_ptr.vmem [resolvable:$true] %s28_s27 }
  0x15   :  { %p240_p9 = scmp.lt.u32.totalorder %s236_s30, %s366_s1 }
  0x17   :  { %p242_p10 = pnand %p240_p9, %p237_p8 }
  0x19   :  { %245 = shalt.err (!%p242_p10)
}
  0x1a   :  { %s246_s8 = scalar_lea.vmem %s29_s27, 512  ;;  %p251_p12 = scmp.lt.s32.totalorder %s29_s27, %s29_s27 }
  0x1b   :  { %p247_p11 = scmp.ne.s32.totalorder %s29_s27, %s246_s8  ;;  %p252_p13 = scmp.lt.s32.totalorder %s246_s8, %s246_s8 }
  0x1d   :  { %p253_p0 = por %p252_p13, %p251_p12 }
  0x1f   :  { %p254_p1 = pnand %p253_p0, %p247_p11 }
  0x21   :  { %257 = shalt.err (!%p254_p1)
}
  0x22   :  { %34 = dma.hbm_to_vmem [thread:$0]  %s366_s1, 512, %s29_s27, [#allocation6], %s287_s22, %s287_s22, %s288_s23  }
  0x23   :  { %280 = dma.done.wait [#allocation3], 384  }
  0x24   :  { %281 = vsyncadd [#allocation3], 4294966912 }
  0x25   :  { %282 = dma.done.wait [#allocation6], 512  }
  0x26   :  { %283 = vsyncadd [#allocation6], 4294966784  ;;  %v290_v0 = vmov 0.0|0.0   ;;  %vm291_vm0 = vmmov 0   ;;  %v292_v1 = vmov 0.0   ;;  %v46_v2 = vld [vmem:[#allocation5] sm:$0xff] }
  0x27   :  { %202 = vmatprep.subr.bf16.mxu1 %v290_v0  ;;  %196 = vmatprep.subr.bf16.mxu0 %v290_v0  ;;  %v47_v3 = vld [vmem:[#allocation5 + $0x8] sm:$0xff]  ;;  %v48_v4 = vld [vmem:[#allocation5 + $0x10] sm:$0xff]  ;;  %v49_v6 = vld [vmem:[#allocation5 + $0x18] sm:$0xff]  ;;  %vm57_vm1 = vcmask 261120   ;;  %s293_s11 = smov [#allocation7]  }
  0x28   :  { %190 = vmatprep.mubr.msk.f32.mxu1 %vm291_vm0, %v292_v1  ;;  %187 = vmatprep.mubr.msk.f32.mxu0 %vm291_vm0, %v292_v1  ;;  %v197_v5 = vpack.c.bf16 %v47_v3, %v46_v2  ;;  %v200_v7 = vpack.c.bf16 %v49_v6, %v48_v4  ;;  %v44_v8 = vld [vmem:[#allocation2 + $0x8] sm:$0xff]  ;;  %v43_v9 = vld [vmem:[#allocation2] sm:$0xff]  ;;  %v45_v10 = vld [vmem:[#allocation2 + $0x10] sm:$0xff]  ;;  %s155_s12 = sshll.u32 %s293_s11, 4  ;;  %s156_s12 = int_to_ptr.vmem [resolvable:$true] %s155_s12 }
  0x29   :  { %v168_v11 = vld [vmem:[%s367_s2] ss:$0 sm:$0xff]  ;;  %s258_s13 = scalar_lea.vmem %s156_s12, 384  ;;  %p263_p3 = scmp.lt.s32.totalorder %s156_s12, %s156_s12 }
  0x2a   :  { %204 = vmatpush3.bf16.msra.mxu1 %v197_v5  ;;  %198 = vmatpush3.bf16.msra.mxu0 %v197_v5  ;;  %p259_p2 = scmp.ne.s32.totalorder %s156_s12, %s258_s13  ;;  %p264_p4 = scmp.lt.s32.totalorder %s258_s13, %s258_s13 }
  0x2b   :  { %203 = vmatprep.subr.bf16.mxu1 %v290_v0  ;;  %199 = vmatprep.subr.bf16.mxu0 %v290_v0 }
  0x2c   :  { %p265_p5 = por %p264_p4, %p263_p3 }
  0x2e   :  { %205 = vmatpush3.bf16.msra.mxu1 %v200_v7  ;;  %201 = vmatpush3.bf16.msra.mxu0 %v200_v7  ;;  %p266_p6 = pnand %p265_p5, %p259_p2 }
  0x31   :  { %191 = vmatmul.mubr.msk.f32.vlgmr.msra.gmra.mrb[0].mxu1 %vm57_vm1, %v44_v8  ;;  %188 = vmatmul.mubr.msk.f32.vlgmr.msra.gmra.mrb[0].mxu0 %vm57_vm1, %v43_v9 }
  0x32   :  { %193 = vmatprep.mubr.msk.f32.mxu1 %vm291_vm0, %v292_v1 }
  0x35   :  { %194 = vmatmul.mubr.msk.f32.gmra.mrb[2].mxu1 %vm57_vm1, %v45_v10 }
 0x104   :  { %v138_v12 = vpop.f32.mrb[0].mxu1  ;;  %v133_v13 = vpop.f32.mrb[0].mxu0 }
 0x105   :  { %v139_v14 = vadd.f32 %v168_v11, %v138_v12  ;;  %v192_v15 = vpop.f32.mrb[1].mxu1  ;;  %v134_v16 = vadd.f32 %v168_v11, %v133_v13  ;;  %v189_v17 = vpop.f32.mrb[1].mxu0 }
 0x107   :  { %148 = vst [vmem:[#allocation7 + $0x8] sm:$0xff] %v139_v14  ;;  %147 = vst [vmem:[#allocation7] sm:$0xff] %v134_v16 }
 0x108   :  { %v143_v18 = vpop.f32.mrb[2].mxu1 }
 0x109   :  { %v144_v19 = vadd.f32 %v168_v11, %v143_v18  ;;  %v195_v20 = vpop.f32.mrb[3].mxu1 }
 0x10b   :  { %149 = vst [vmem:[#allocation7 + $0x10] sm:$0xff] %v144_v19 }
 0x10c   :  { %269 = shalt.err (!%p266_p6)
}
 0x10d   :  { %s270_s15 = scalar_lea.hbm %s368_s3, 384 }
 0x10e   :  { %p271_p7 = scmp.ne.s32.totalorder %s368_s3, %s270_s15  ;;  %p274_p8 = scmp.lt.u32.totalorder %s270_s15, %s368_s3 }
 0x110   :  { %p276_p9 = pnand %p274_p8, %p271_p7 }
 0x112   :  { %279 = shalt.err (!%p276_p9)
}
 0x113   :  { %161 = dma.vmem_to_hbm [thread:$0]  %s156_s12, 384, %s368_s3, [#allocation4], %s287_s22, %s287_s22, %s288_s23  }
 0x114   :  { %284 = dma.done.wait [#allocation4], 384  }
 0x115   :  { %285 = vsyncadd [#allocation4], 4294966912 }
 0x116   :  { %165 = vsyncpa [#allocation3], 1 }
 0x117   :  { %166 = vsyncpa [#allocation6], 1 }
 0x118   :  { %167 = vsyncpa [#allocation4], 1 }

</bundles_post_ra>
